<compile_context>
chip_gen: v7x
topology: tpu7x:2x2x1
jax: 0.10.0
libtpu: 0.0.40
codegen_flags: <defaults>
</compile_context>

<pallas_src>
import functools

import jax
import jax.numpy as jnp
from jax import lax
from jax.experimental import pallas as pl
from jax.experimental.pallas import tpu as pltpu


def _cdiv(a, b):
    return -(-a // b)


def _round_up(x, m):
    return _cdiv(x, m) * m


def _num_core_splits():
    """2 on chips with two TensorCores per Pallas device (v7x), else 1."""
    try:
        kind = jax.devices()[0].device_kind.lower()
    except Exception:
        return 1
    if "v7" in kind or "7x" in kind:
        return 2
    return 1


def _bce_kernel(logits_ref, labels_ref, pw_ref, out_ref, *, batch, tb, need_mask):
    """One (tb, C) tile of logits/labels -> accumulate (1, C) partial into out."""
    s = pl.program_id(0)          # core-parallel split
    i = pl.program_id(1)          # reduction step within the split

    @pl.when(i == 0)
    def _():
        out_ref[...] = jnp.zeros_like(out_ref)

    x = logits_ref[...].astype(jnp.float32)
    y = labels_ref[...].astype(jnp.float32)
    pw = pw_ref[...].astype(jnp.float32)          # (1, C) -> broadcast over rows

    # stable softplus(x); loss = (pw*y + 1 - y)*softplus(x) - pw*y*x
    sp_pos = jnp.maximum(x, 0.0) + jnp.log1p(jnp.exp(-jnp.abs(x)))
    w = pw * y
    loss = (w + 1.0 - y) * sp_pos - w * x         # (tb, C) elementwise on VPU/EUP

    def _accumulate(vals):
        # Sublane (row) reduce -> XLU slot (idle in this kernel), then a (1, C)
        # VPU add into the resident output block.
        out_ref[...] += jnp.sum(vals, axis=0, keepdims=True)

    if need_mask:
        steps = pl.num_programs(1)
        row_start = (s * steps + i) * tb

        @pl.when(row_start + tb <= batch)         # full tile: no mask work
        def _():
            _accumulate(loss)

        @pl.when(row_start + tb > batch)          # tail / duplicated tile only
        def _():
            rows = lax.broadcasted_iota(jnp.int32, loss.shape, 0)
            _accumulate(jnp.where(row_start + rows < batch, loss, 0.0))
    else:
        _accumulate(loss)


def global_loss_pallas(logits, labels, pos_weight, *,
                       target_tile_bytes=4 << 20, tb_cap=2048):
    """BCEWithLogitsLoss(pos_weight=pos_weight, reduction='mean').

    logits/labels may be f32 or bf16 (bf16 halves HBM traffic; math is f32
    in-kernel). pos_weight is a (C,) vector.
    """
    B, C = logits.shape
    assert labels.shape == (B, C)
    assert pos_weight.shape == (C,)

    in_itemsize = max(jnp.dtype(logits.dtype).itemsize,
                      jnp.dtype(labels.dtype).itemsize)

    # Row-tile sizing: ~target_tile_bytes per streamed input tile (dtype-aware),
    # rounded to a multiple of 32 sublanes (valid granularity for f32/bf16/int8).
    tb = target_tile_bytes // (in_itemsize * C)
    tb = max(32, min(tb_cap, (tb // 32) * 32))
    tb = min(tb, _round_up(B, 32))

    total_tiles = _cdiv(B, tb)

    # Split across TensorCores only where a second core actually exists (v7x).
    num_splits = 2 if (_num_core_splits() >= 2 and total_tiles >= 2) else 1
    steps = _cdiv(total_tiles, num_splits)
    need_mask = (num_splits * steps * tb) != B    # padded or duplicated rows

    pw2d = pos_weight.reshape(1, C).astype(jnp.float32)

    def data_map(s, i):
        # Clamp so duplicated tail tiles stay in bounds; their rows are masked.
        return (jnp.minimum(s * steps + i, total_tiles - 1), 0)

    if num_splits > 1:
        split_sem = getattr(pltpu, "CORE_PARALLEL", None) or pltpu.PARALLEL
        dim_sem = (split_sem, pltpu.ARBITRARY)
    else:
        dim_sem = ("arbitrary", "arbitrary")

    # VMEM budget: two double-buffered streamed input tiles dominate; output
    # partial + pos_weight are tiny. Keep within v7x's 64 MiB physical VMEM.
    vmem_needed = 2 * 2 * tb * C * in_itemsize + 64 * C * 4
    vmem_limit = int(min(max(vmem_needed + (2 << 20), 24 << 20), 56 << 20))

    cost = pl.CostEstimate(
        flops=10 * B * C,
        transcendentals=2 * B * C,
        bytes_accessed=B * C * (jnp.dtype(logits.dtype).itemsize
                                + jnp.dtype(labels.dtype).itemsize)
                       + (1 + num_splits) * C * 4,
    )

    partials = pl.pallas_call(
        functools.partial(_bce_kernel, batch=B, tb=tb, need_mask=need_mask),
        out_shape=jax.ShapeDtypeStruct((num_splits, C), jnp.float32),
        grid_spec=pltpu.PrefetchScalarGridSpec(
            num_scalar_prefetch=0,
            grid=(num_splits, steps),
            in_specs=[
                pl.BlockSpec((tb, C), data_map),            # logits tile
                pl.BlockSpec((tb, C), data_map),            # labels tile
                pl.BlockSpec((1, C), lambda s, i: (0, 0)),  # pos_weight (resident)
            ],
            out_specs=pl.BlockSpec((1, C), lambda s, i: (s, 0)),
        ),
        compiler_params=pltpu.CompilerParams(
            dimension_semantics=dim_sem,
            vmem_limit_bytes=vmem_limit,
        ),
        cost_estimate=cost,
    )(logits, labels, pw2d)

    return jnp.sum(partials) * (1.0 / float(B * C))


def global_loss_ref(logits, labels, pos_weight):
    """Pure-JAX reference for BCEWithLogitsLoss(pos_weight, mean)."""
    x = logits.astype(jnp.float32)
    y = labels.astype(jnp.float32)
    pw = pos_weight.astype(jnp.float32)
    sp_pos = jnp.maximum(x, 0.0) + jnp.log1p(jnp.exp(-jnp.abs(x)))
    sp_neg = sp_pos - x
    loss = pw * y * sp_neg + (1.0 - y) * sp_pos
    return jnp.mean(loss)


if __name__ == "__main__":
    key = jax.random.PRNGKey(0)

    # --- Test 1: module config (num_classes per level, uniform bce_pos_weight) ---
    num_classes = (32, 96)            # sum = 128 total classes (lane-aligned)
    bce_pos_weight = 5.0
    C = sum(num_classes)
    B = 16

    pos_weight = jnp.ones((C,), dtype=jnp.float32) * bce_pos_weight
    k1, k2, k3, k4, k5, k6 = jax.random.split(key, 6)
    logits = jax.random.normal(k1, (B, C), dtype=jnp.float32)
    labels = (jax.random.uniform(k2, (B, C)) > 0.7).astype(jnp.float32)

    out = jax.block_until_ready(global_loss_pallas(logits, labels, pos_weight))
    ref = global_loss_ref(logits, labels, pos_weight)
    assert jnp.allclose(out, ref, rtol=1e-5, atol=1e-6), (out, ref)

    # --- Test 2: ragged batch + multiple reduction steps + tail-mask path ---
    B2, C2 = 100, 192                 # B2 not a multiple of the row tile
    pos_weight2 = jnp.ones((C2,), dtype=jnp.float32) * 3.0
    logits2 = jax.random.normal(k3, (B2, C2), dtype=jnp.float32)
    labels2 = (jax.random.uniform(k4, (B2, C2)) > 0.5).astype(jnp.float32)

    out2 = jax.block_until_ready(
        global_loss_pallas(logits2, labels2, pos_weight2, tb_cap=32))
    ref2 = global_loss_ref(logits2, labels2, pos_weight2)
    assert jnp.allclose(out2, ref2, rtol=1e-5, atol=1e-6), (out2, ref2)

    # --- Test 3: bf16 inputs (caller contract), exact-cover (no-mask) path ---
    B3, C3 = 64, 128
    pos_weight3 = jnp.ones((C3,), dtype=jnp.float32) * 2.0
    logits3 = jax.random.normal(k5, (B3, C3), dtype=jnp.float32).astype(jnp.bfloat16)
    labels3 = (jax.random.uniform(k6, (B3, C3)) > 0.6).astype(jnp.bfloat16)

    out3 = jax.block_until_ready(global_loss_pallas(logits3, labels3, pos_weight3))
    ref3 = global_loss_ref(logits3, labels3, pos_weight3)
    assert jnp.allclose(out3, ref3, rtol=1e-5, atol=1e-5), (out3, ref3)

    print("KERNEL_OK")
</pallas_src>

<mosaic_0001>
module attributes {stable_mosaic.version = 11 : i64} {
  func.func @_bce_kernel(%arg0: i32, %arg1: i32, %arg2: memref<32x128xf32, #tpu.memory_space<vmem>>, %arg3: memref<32x128xf32, #tpu.memory_space<vmem>>, %arg4: memref<1x128xf32, #tpu.memory_space<vmem>>, %arg5: memref<1x128xf32, #tpu.memory_space<vmem>>) attributes {dimension_semantics = [#tpu.dimension_semantics<arbitrary>, #tpu.dimension_semantics<arbitrary>], iteration_bounds = array<i64: 1, 1>, scalar_prefetch = 0 : i64, scratch_operands = 0 : i64, tpu.core_type = #tpu.core_type<tc>, window_params = [{transform_indices = @transform_0, window_bounds = array<i64: 32, 128>}, {transform_indices = @transform_1, window_bounds = array<i64: 32, 128>}, {pipeline_mode = #tpu.pipeline_mode<synchronous>, transform_indices = @transform_2, window_bounds = array<i64: 1, 128>}, {transform_indices = @transform_3, window_bounds = array<i64: 1, 128>}]} {
    %c0_i32 = arith.constant 0 : i32
    %0 = arith.cmpi eq, %arg1, %c0_i32 : i32
    %1 = arith.extui %0 : i1 to i32
    %c0_i32_0 = arith.constant 0 : i32
    %2 = arith.cmpi ne, %1, %c0_i32_0 : i32
    scf.if %2 {
      %cst_13 = arith.constant 0.000000e+00 : f32
      %33 = vector.broadcast %cst_13 : f32 to vector<1x128xf32>
      %c0_14 = arith.constant 0 : index
      %c0_15 = arith.constant 0 : index
      %34 = vector.load %arg5[%c0_14, %c0_15] : memref<1x128xf32, #tpu.memory_space<vmem>>, vector<1x128xf32>
      tpu.vector_store %arg5[%c0_14, %c0_15], %33 {strides = array<i32>} : memref<1x128xf32, #tpu.memory_space<vmem>>, vector<1x128xf32>,
    } else {
    }
    %c0 = arith.constant 0 : index
    %c0_1 = arith.constant 0 : index
    %3 = vector.load %arg2[%c0, %c0_1] : memref<32x128xf32, #tpu.memory_space<vmem>>, vector<32x128xf32>
    %c0_2 = arith.constant 0 : index
    %c0_3 = arith.constant 0 : index
    %4 = vector.load %arg3[%c0_2, %c0_3] : memref<32x128xf32, #tpu.memory_space<vmem>>, vector<32x128xf32>
    %c0_4 = arith.constant 0 : index
    %c0_5 = arith.constant 0 : index
    %5 = vector.load %arg4[%c0_4, %c0_5] : memref<1x128xf32, #tpu.memory_space<vmem>>, vector<1x128xf32>
    %cst = arith.constant 0.000000e+00 : f32
    %6 = vector.broadcast %cst : f32 to vector<32x128xf32>
    %7 = arith.maximumf %3, %6 : vector<32x128xf32>
    %8 = math.absf %3 : vector<32x128xf32>
    %cst_6 = arith.constant 0.000000e+00 : f32
    %9 = vector.broadcast %cst_6 : f32 to vector<32x128xf32>
    %10 = arith.subf %9, %8 : vector<32x128xf32>
    %11 = math.exp %10 : vector<32x128xf32>
    %12 = math.log1p %11 : vector<32x128xf32>
    %13 = arith.addf %7, %12 : vector<32x128xf32>
    %14 = vector.broadcast %5 : vector<1x128xf32> to vector<32x128xf32>
    %15 = arith.mulf %14, %4 : vector<32x128xf32>
    %cst_7 = arith.constant 1.000000e+00 : f32
    %16 = vector.broadcast %cst_7 : f32 to vector<32x128xf32>
    %17 = arith.addf %15, %16 : vector<32x128xf32>
    %18 = arith.subf %17, %4 : vector<32x128xf32>
    %19 = arith.mulf %18, %13 : vector<32x128xf32>
    %20 = arith.mulf %15, %3 : vector<32x128xf32>
    %21 = arith.subf %19, %20 : vector<32x128xf32>
    %c1_i32 = arith.constant 1 : i32
    %22 = arith.muli %arg0, %c1_i32 : i32
    %23 = arith.addi %22, %arg1 : i32
    %c32_i32 = arith.constant 32 : i32
    %24 = arith.muli %23, %c32_i32 : i32
    %c32_i32_8 = arith.constant 32 : i32
    %25 = arith.addi %24, %c32_i32_8 : i32
    %c16_i32 = arith.constant 16 : i32
    %26 = arith.cmpi sle, %25, %c16_i32 : i32
    %27 = arith.extui %26 : i1 to i32
    %c0_i32_9 = arith.constant 0 : i32
    %28 = arith.cmpi ne, %27, %c0_i32_9 : i32
    scf.if %28 {
      %c0_13 = arith.constant 0 : index
      %c0_14 = arith.constant 0 : index
      %33 = vector.load %arg5[%c0_13, %c0_14] : memref<1x128xf32, #tpu.memory_space<vmem>>, vector<1x128xf32>
      %cst_15 = arith.constant dense<0.000000e+00> : vector<128xf32>
      %34 = vector.multi_reduction <add>, %21, %cst_15 [0] : vector<32x128xf32> to vector<128xf32>
      %35 = vector.shape_cast %34 : vector<128xf32> to vector<1x128xf32>
      %36 = arith.addf %33, %35 : vector<1x128xf32>
      %c0_16 = arith.constant 0 : index
      %c0_17 = arith.constant 0 : index
      %37 = vector.load %arg5[%c0_16, %c0_17] : memref<1x128xf32, #tpu.memory_space<vmem>>, vector<1x128xf32>
      tpu.vector_store %arg5[%c0_16, %c0_17], %36 {strides = array<i32>} : memref<1x128xf32, #tpu.memory_space<vmem>>, vector<1x128xf32>,
    } else {
    }
    %c32_i32_10 = arith.constant 32 : i32
    %29 = arith.addi %24, %c32_i32_10 : i32
    %c16_i32_11 = arith.constant 16 : i32
    %30 = arith.cmpi sgt, %29, %c16_i32_11 : i32
    %31 = arith.extui %30 : i1 to i32
    %c0_i32_12 = arith.constant 0 : i32
    %32 = arith.cmpi ne, %31, %c0_i32_12 : i32
    scf.if %32 {
      %33 = tpu.iota {dimensions = array<i32: 0>} : vector<32x128xi32>
      %34 = vector.broadcast %24 : i32 to vector<32x128xi32>
      %35 = arith.addi %34, %33 : vector<32x128xi32>
      %c16_i32_13 = arith.constant 16 : i32
      %36 = vector.broadcast %c16_i32_13 : i32 to vector<32x128xi32>
      %37 = arith.cmpi slt, %35, %36 : vector<32x128xi32>
      %cst_14 = arith.constant 0.000000e+00 : f32
      %38 = vector.broadcast %cst_14 : f32 to vector<32x128xf32>
      %39 = arith.select %37, %21, %38 : vector<32x128xi1>, vector<32x128xf32>
      %c0_15 = arith.constant 0 : index
      %c0_16 = arith.constant 0 : index
      %40 = vector.load %arg5[%c0_15, %c0_16] : memref<1x128xf32, #tpu.memory_space<vmem>>, vector<1x128xf32>
      %cst_17 = arith.constant dense<0.000000e+00> : vector<128xf32>
      %41 = vector.multi_reduction <add>, %39, %cst_17 [0] : vector<32x128xf32> to vector<128xf32>
      %42 = vector.shape_cast %41 : vector<128xf32> to vector<1x128xf32>
      %43 = arith.addf %40, %42 : vector<1x128xf32>
      %c0_18 = arith.constant 0 : index
      %c0_19 = arith.constant 0 : index
      %44 = vector.load %arg5[%c0_18, %c0_19] : memref<1x128xf32, #tpu.memory_space<vmem>>, vector<1x128xf32>
      tpu.vector_store %arg5[%c0_18, %c0_19], %43 {strides = array<i32>} : memref<1x128xf32, #tpu.memory_space<vmem>>, vector<1x128xf32>,
    } else {
    }
    return
  }
  func.func @transform_0(%arg0: i32, %arg1: i32) -> (i32, i32) {
    %c1_i32 = arith.constant 1 : i32
    %0 = arith.muli %arg0, %c1_i32 : i32
    %1 = arith.addi %0, %arg1 : i32
    %c0_i32 = arith.constant 0 : i32
    %2 = arith.minsi %1, %c0_i32 : i32
    %c0_i32_0 = arith.constant 0 : i32
    %c0_i32_1 = arith.constant 0 : i32
    return %2, %c0_i32_0 : i32, i32
  }
  func.func @transform_1(%arg0: i32, %arg1: i32) -> (i32, i32) {
    %c1_i32 = arith.constant 1 : i32
    %0 = arith.muli %arg0, %c1_i32 : i32
    %1 = arith.addi %0, %arg1 : i32
    %c0_i32 = arith.constant 0 : i32
    %2 = arith.minsi %1, %c0_i32 : i32
    %c0_i32_0 = arith.constant 0 : i32
    %c0_i32_1 = arith.constant 0 : i32
    return %2, %c0_i32_0 : i32, i32
  }
  func.func @transform_2(%arg0: i32, %arg1: i32) -> (i32, i32) {
    %c0_i32 = arith.constant 0 : i32
    %c0_i32_0 = arith.constant 0 : i32
    %c0_i32_1 = arith.constant 0 : i32
    return %c0_i32, %c0_i32_0 : i32, i32
  }
  func.func @transform_3(%arg0: i32, %arg1: i32) -> (i32, i32) {
    %c0_i32 = arith.constant 0 : i32
    %c0_i32_0 = arith.constant 0 : i32
    return %arg0, %c0_i32 : i32, i32
  }
}

</mosaic_0001>

<bundles_post_ra>
// kernel: tpu_custom_call.1
= control target key start
LH: loop header
LB: loop body
LE: loop exit
PB: predicated region body
PF: predicated region fallthrough
CT: control target
= control target key end

     0   :  { %8 = vsyncpa [#allocation3], 0  ;;  %s404_s0 = inlined_call_operand.hbm [shape: f32[16,128], index: 0, kind: input, shape index: {}]   ;;  %s405_s1 = inlined_call_operand.hbm [shape: f32[16,128], index: 1, kind: input, shape index: {}]   ;;  %s406_s2 = inlined_call_operand.vmem [shape: f32[1,128], index: 2, kind: input, shape index: {}]   ;;  %s407_s3 = inlined_call_operand.hbm [shape: f32[1,128], index: 3, kind: output, shape index: {}]  }
   0x1   :  { %9 = vsyncpa [#allocation6], 0 }
   0x2   :  { %10 = vsyncpa [#allocation4], 0 }
   0x3   :  { %21 = vsyncadd [#allocation3], 256  ;;  %s339_s12 = smov [#allocation2]   ;;  %s267_s16 = scalar_lea.hbm %s404_s0, 256 }
   0x4   :  { %s26_s13 = sshll.u32 %s339_s12, 4  ;;  %p268_p0 = scmp.ne.s32.totalorder %s404_s0, %s267_s16  ;;  %s27_s13 = int_to_ptr.vmem [resolvable:$true] %s26_s13 }
   0x5   :  { %p271_p1 = scmp.lt.u32.totalorder %s267_s16, %s404_s0 }
   0x7   :  { %p273_p2 = pnand %p271_p1, %p268_p0 }
   0x9   :  { %276 = shalt.err (!%p273_p2)
}
   0xa   :  { %s277_s21 = scalar_lea.vmem %s27_s13, 256  ;;  %s281_s22 = scalar_lea.vmem %s27_s13, 512 }
   0xb   :  { %p278_p3 = scmp.ne.s32.totalorder %s27_s13, %s277_s21  ;;  %p282_p4 = scmp.lt.s32.totalorder %s27_s13, %s27_s13 }
   0xc   :  { %p283_p5 = scmp.lt.s32.totalorder %s281_s22, %s277_s21 }
   0xe   :  { %p284_p6 = por %p283_p5, %p282_p4 }
  0x10   :  { %p285_p7 = pnand %p284_p6, %p278_p3 }
  0x12   :  { %288 = shalt.err (!%p285_p7)
}
  0x13   :  { %s340_s23 = smov 128   ;;  %s341_s24 = smov 8  }
  0x14   :  { %32 = dma.hbm_to_vmem [thread:$0]  %s404_s0, 256, %s27_s13, [#allocation3], %s340_s23, %s340_s23, %s341_s24  }
  0x15   :  { %43 = vsyncadd [#allocation6], 256  ;;  %s342_s27 = smov [#allocation5]   ;;  %s289_s4 = scalar_lea.hbm %s405_s1, 256 }
  0x16   :  { %s48_s28 = sshll.u32 %s342_s27, 4  ;;  %p290_p8 = scmp.ne.s32.totalorder %s405_s1, %s289_s4  ;;  %s49_s28 = int_to_ptr.vmem [resolvable:$true] %s48_s28 }
  0x17   :  { %p293_p9 = scmp.lt.u32.totalorder %s289_s4, %s405_s1 }
  0x19   :  { %p295_p10 = pnand %p293_p9, %p290_p8 }
  0x1b   :  { %298 = shalt.err (!%p295_p10)
}
  0x1c   :  { %s299_s9 = scalar_lea.vmem %s49_s28, 256  ;;  %s303_s0 = scalar_lea.vmem %s49_s28, 512 }
  0x1d   :  { %p300_p11 = scmp.ne.s32.totalorder %s49_s28, %s299_s9  ;;  %p304_p12 = scmp.lt.s32.totalorder %s49_s28, %s49_s28 }
  0x1e   :  { %p305_p13 = scmp.lt.s32.totalorder %s303_s0, %s299_s9 }
  0x20   :  { %p306_p0 = por %p305_p13, %p304_p12 }
  0x22   :  { %p307_p1 = pnand %p306_p0, %p300_p11 }
  0x24   :  { %310 = shalt.err (!%p307_p1)
}
  0x25   :  { %54 = dma.hbm_to_vmem [thread:$0]  %s405_s1, 256, %s49_s28, [#allocation6], %s340_s23, %s340_s23, %s341_s24  }
  0x26   :  { %333 = dma.done.wait [#allocation3], 512  }
  0x27   :  { %334 = vsyncadd [#allocation3], 4294966784 }
  0x28   :  { %335 = dma.done.wait [#allocation6], 512  }
  0x29   :  { %336 = vsyncadd [#allocation6], 4294966784  ;;  %v343_v0 = vmov 0.0   ;;  %v80_v1 = vld [vmem:[#allocation2] sm:$0xff]  ;;  %v81_v2 = vld [vmem:[#allocation2 + $0x8] sm:$0xff] }
  0x2a   :  { %79 = vst [vmem:[#allocation7] sm:$0x1] %v343_v0  ;;  %v93_v3 = vand.u32 2147483647, %v80_v1  ;;  %v94_v4 = vand.u32 2147483647, %v81_v2 }
  0x2b   :  { %v84_v13 = vld [vmem:[#allocation5] sm:$0xff]  ;;  %v85_v16 = vld [vmem:[#allocation5 + $0x8] sm:$0xff]  ;;  %v89_v28 = vmax.f32 %v80_v1, 0.0  ;;  %v90_v31 = vmax.f32 %v81_v2, 0.0 }
  0x2c   :  { %v97_v5 = vsub.f32 0.0, %v93_v3  ;;  %v98_v6 = vsub.f32 0.0, %v94_v4  ;;  %v252_v14 = vld [vmem:[%s406_s2] ss:$0 sm:$0xff]  ;;  %s344_s2 = smov [#allocation7]  }
  0x2d   :  { %v155_v18 = vmul.f32 %v252_v14, %v84_v13  ;;  %v156_v20 = vmul.f32 %v252_v14, %v85_v16  ;;  %s238_s13 = sshll.u32 %s344_s2, 4  ;;  %s239_s13 = int_to_ptr.vmem [resolvable:$true] %s238_s13 }
  0x2e   :  { %v101_v7 = vmul.f32 1.442695, %v97_v5  ;;  %v103_v8 = vmul.f32 1.442695, %v98_v6  ;;  %s311_s14 = scalar_lea.vmem %s239_s13, 16  ;;  %s315_s15 = scalar_lea.vmem %s239_s13, 32 }
  0x2f   :  { %v159_v24 = vadd.f32 1.0, %v155_v18  ;;  %v160_v26 = vadd.f32 1.0, %v156_v20  ;;  %v171_v39 = vmul.f32 %v155_v18, %v80_v1  ;;  %v172_v41 = vmul.f32 %v156_v20, %v81_v2  ;;  %p312_p2 = scmp.ne.s32.totalorder %s239_s13, %s311_s14  ;;  %p316_p3 = scmp.lt.s32.totalorder %s239_s13, %s239_s13 }
  0x30   :  { %259 = vpow2.f32 %v101_v7  ;;  %p317_p4 = scmp.lt.s32.totalorder %s315_s15, %s311_s14 }
  0x31   :  { %261 = vpow2.f32 %v103_v8  ;;  %v163_v34 = vsub.f32 %v159_v24, %v84_v13  ;;  %v164_v36 = vsub.f32 %v160_v26, %v85_v16  ;;  %v220_v52 = vld [vmem:[#allocation7] sm:$0x1] }
  0x32   :  { %p318_p5 = por %p317_p4, %p316_p3 }
  0x34   :  { %p319_p6 = pnand %p318_p5, %p312_p2 }
  0x3a   :  { %v260_v9 = vpop.eup %259 }
  0x3b   :  { %v262_v10 = vpop.eup %261  ;;  %v109_v11 = vadd.f32 1.0, %v260_v9  ;;  %v112_v15 = vmul.f32 -0.5, %v260_v9  ;;  %v115_v21 = vand.u32 2147483647, %v260_v9 }
  0x3c   :  { %v118_v12 = vadd.f32 1.0, %v262_v10  ;;  %v121_v17 = vmul.f32 -0.5, %v262_v10  ;;  %v124_v23 = vand.u32 2147483647, %v262_v10 }
  0x3d   :  { %263 = vlog2.f32 %v109_v11  ;;  %v113_v19 = vadd.f32 1.0, %v112_v15  ;;  %vm116_vm0 = vcmp.lt.f32.partialorder %v115_v21, 0.0004427343 }
  0x3e   :  { %265 = vlog2.f32 %v118_v12  ;;  %v122_v22 = vadd.f32 1.0, %v121_v17  ;;  %vm125_vm1 = vcmp.lt.f32.partialorder %v124_v23, 0.0004427343 }
  0x3f   :  { %v114_v25 = vmul.f32 %v260_v9, %v113_v19 }
  0x40   :  { %v123_v29 = vmul.f32 %v262_v10, %v122_v22 }
  0x47   :  { %v264_v27 = vpop.eup %263 }
  0x48   :  { %v266_v30 = vpop.eup %265  ;;  %v111_v32 = vmul.f32 0.6931472, %v264_v27 }
  0x49   :  { %v120_v33 = vmul.f32 0.6931472, %v266_v30 }
  0x4a   :  { %v117_v35 = vsel %vm116_vm0, %v114_v25, %v111_v32 }
  0x4b   :  { %v126_v37 = vsel %vm125_vm1, %v123_v29, %v120_v33  ;;  %v145_v38 = vadd.f32 %v117_v35, %v89_v28 }
  0x4c   :  { %v146_v40 = vadd.f32 %v126_v37, %v90_v31 }
  0x4d   :  { %v167_v42 = vmul.f32 %v163_v34, %v145_v38 }
  0x4e   :  { %v168_v43 = vmul.f32 %v164_v36, %v146_v40 }
  0x4f   :  { %v175_v44 = vsub.f32 %v167_v42, %v171_v39 }
  0x50   :  { %v176_v45 = vsub.f32 %v168_v43, %v172_v41 }
  0x52   :  { %v221_v46 = vadd.f32 %v176_v45, %v175_v44 }
  0x54   :  { %v224_v47 = vrot.slane %v221_v46, 4 }
  0x56   :  { %v225_v48 = vadd.f32 %v224_v47, %v221_v46 }
  0x58   :  { %v226_v49 = vrot.slane %v225_v48, 2 }
  0x5a   :  { %v227_v50 = vadd.f32 %v226_v49, %v225_v48 }
  0x5c   :  { %v228_v51 = vrot.slane %v227_v50, 1 }
  0x5e   :  { %v229_v53 = vadd.f32 %v228_v51, %v227_v50 }
  0x60   :  { %v230_v54 = vadd.f32 %v229_v53, %v220_v52 }
  0x62   :  { %231 = vst [vmem:[#allocation7] sm:$0x1] %v230_v54 }
  0x63   :  { %322 = shalt.err (!%p319_p6)
}
  0x64   :  { %s323_s18 = scalar_lea.hbm %s407_s3, 16 }
  0x65   :  { %p324_p7 = scmp.ne.s32.totalorder %s407_s3, %s323_s18  ;;  %p327_p8 = scmp.lt.u32.totalorder %s323_s18, %s407_s3 }
  0x67   :  { %p329_p9 = pnand %p327_p8, %p324_p7 }
  0x69   :  { %332 = shalt.err (!%p329_p9)
}
  0x6a   :  { %241 = dma.vmem_to_hbm [thread:$0]  %s239_s13, 16, %s407_s3, [#allocation4]  }
  0x6b   :  { %337 = dma.done.wait [#allocation4], 16  }
  0x6c   :  { %338 = vsyncadd [#allocation4], 4294967280 }
  0x6d   :  { %245 = vsyncpa [#allocation3], 1 }
  0x6e   :  { %246 = vsyncpa [#allocation6], 1 }
  0x6f   :  { %247 = vsyncpa [#allocation4], 1 }

</bundles_post_ra>
